<compile_context>
chip_gen: v7x
topology: tpu7x:2x2x1
jax: 0.10.0
libtpu: 0.0.40
codegen_flags: <defaults>
</compile_context>

<pallas_src>
import functools
import math

import jax
import jax.numpy as jnp
from jax.experimental import pallas as pl
from jax.experimental.pallas import tpu as pltpu


def _layer_norm(x, gamma, beta, eps=1e-5):
    mean = jnp.mean(x, axis=-1, keepdims=True)
    var = jnp.mean((x - mean) ** 2, axis=-1, keepdims=True)
    return (x - mean) * jax.lax.rsqrt(var + eps) * gamma + beta


def encoder_layer_kernel(x_ref,
                         wqkv_ref, bqkv_ref, wo_ref, bo_ref,
                         w1_ref, b1_ref, w2_ref, b2_ref,
                         ln_ref,
                         out_ref, *maybe_attn,
                         n_heads, activation, apply_final_norm,
                         output_attention):
    """One Informer EncoderLayer (+ optional encoder-final LayerNorm) for one batch elem."""
    x = x_ref[0].astype(jnp.float32)                 # (L, D)
    L, D = x.shape
    H = n_heads
    dh = D // H
    scale = 1.0 / math.sqrt(dh)

    # ---- Fused QKV projection: one (L, D) @ (D, 3D) bf16 MXU matmul, f32 accumulate.
    x_bf = x.astype(jnp.bfloat16)
    qkv = jnp.dot(x_bf, wqkv_ref[...],
                  preferred_element_type=jnp.float32) + bqkv_ref[0]
    q = qkv[:, :D]
    k = qkv[:, D:2 * D]
    v = qkv[:, 2 * D:]

    # ---- Batched multi-head attention (single batched contraction per step).
    qh = jnp.stack([q[:, h * dh:(h + 1) * dh] for h in range(H)],
                   axis=0).astype(jnp.bfloat16)      # (H, L, dh)
    kh = jnp.stack([k[:, h * dh:(h + 1) * dh] for h in range(H)],
                   axis=0).astype(jnp.bfloat16)
    vh = jnp.stack([v[:, h * dh:(h + 1) * dh] for h in range(H)],
                   axis=0).astype(jnp.bfloat16)

    s = jnp.einsum('hld,hmd->hlm', qh, kh,
                   preferred_element_type=jnp.float32) * scale       # (H, L, L)
    s = s - jnp.max(s, axis=-1, keepdims=True)
    p = jnp.exp(s)                                                    # f32 softmax
    p = p * pl.reciprocal(jnp.sum(p, axis=-1, keepdims=True), approx=True)
    if output_attention:
        maybe_attn[0][0] = p.astype(maybe_attn[0].dtype)              # bf16 writeback

    ctx = jnp.einsum('hlm,hmd->hld', p.astype(jnp.bfloat16), vh,
                     preferred_element_type=jnp.float32)              # (H, L, dh)
    attn_out = jnp.concatenate([ctx[h] for h in range(H)], axis=-1)   # (L, D)

    new_x = jnp.dot(attn_out.astype(jnp.bfloat16), wo_ref[...],
                    preferred_element_type=jnp.float32) + bo_ref[0]

    # ---- Residual + norm1 (f32 elementwise math).
    x1 = _layer_norm(x + new_x, ln_ref[0], ln_ref[1])

    # ---- FFN: Conv1d(kernel_size=1) over channels == per-position Linear.
    y = jnp.dot(x1.astype(jnp.bfloat16), w1_ref[...],
                preferred_element_type=jnp.float32) + b1_ref[0]
    if activation == 'relu':
        y = jnp.maximum(y, 0.0)
    else:
        # TODO(synk): tanh-approx GELU (torch F.gelu uses the exact erf form).
        y = jax.nn.gelu(y, approximate=True)
    y = jnp.dot(y.astype(jnp.bfloat16), w2_ref[...],
                preferred_element_type=jnp.float32) + b2_ref[0]

    # ---- Residual + norm2; encoder-final norm only on the last layer.
    x2 = _layer_norm(x1 + y, ln_ref[2], ln_ref[3])
    if apply_final_norm:
        x2 = _layer_norm(x2, ln_ref[4], ln_ref[5])

    out_ref[0] = x2.astype(out_ref.dtype)


def _full_spec(arr):
    nd = arr.ndim
    return pl.BlockSpec(arr.shape, lambda b, _nd=nd: (0,) * _nd)


def run_encoder_layer(x, lp, lnf_g, lnf_b, n_heads, activation,
                      apply_final_norm, output_attention):
    B, L, D = x.shape
    ln_pack = jnp.concatenate(
        [lp['ln1_g'], lp['ln1_b'], lp['ln2_g'], lp['ln2_b'], lnf_g, lnf_b],
        axis=0)                                                       # (6, D) f32
    weights = (lp['wqkv'], lp['bqkv'], lp['wo'], lp['bo'],
               lp['w1'], lp['b1'], lp['w2'], lp['b2'], ln_pack)

    kernel = functools.partial(
        encoder_layer_kernel, n_heads=n_heads, activation=activation,
        apply_final_norm=apply_final_norm, output_attention=output_attention)

    in_specs = [pl.BlockSpec((1, L, D), lambda b: (b, 0, 0))]
    in_specs += [_full_spec(w) for w in weights]

    if output_attention:
        out_shape = (jax.ShapeDtypeStruct((B, L, D), x.dtype),
                     jax.ShapeDtypeStruct((B, n_heads, L, L), jnp.bfloat16))
        out_specs = (pl.BlockSpec((1, L, D), lambda b: (b, 0, 0)),
                     pl.BlockSpec((1, n_heads, L, L), lambda b: (b, 0, 0, 0)))
    else:
        out_shape = jax.ShapeDtypeStruct((B, L, D), x.dtype)
        out_specs = pl.BlockSpec((1, L, D), lambda b: (b, 0, 0))

    result = pl.pallas_call(
        kernel,
        out_shape=out_shape,
        grid=(B,),
        in_specs=in_specs,
        out_specs=out_specs,
        compiler_params=pltpu.CompilerParams(
            dimension_semantics=("parallel",),
            vmem_limit_bytes=48 * 1024 * 1024),
    )(x, *weights)

    if output_attention:
        return result[0], result[1]
    return result, None


def run_encoder(x, enc_params, n_heads, activation, output_attention):
    """One Informer Encoder: e_layers EncoderLayers + final LayerNorm."""
    layers = enc_params['layers']
    attns = []
    for i, lp in enumerate(layers):
        x, attn = run_encoder_layer(
            x, lp, enc_params['lnf_g'], enc_params['lnf_b'],
            n_heads, activation,
            apply_final_norm=(i == len(layers) - 1),
            output_attention=output_attention)
        attns.append(attn)
    return x, attns


def encoder_stack_forward(x, encoders_params, inp_lens, n_heads,
                          activation='gelu', output_attention=False):
    """EncoderStack.forward: slice seq tail by 2**i_len, run encoder, concat."""
    B, L, D = x.shape
    x_stack, attns = [], []
    for i_len, enc_p in zip(inp_lens, encoders_params):
        inp_len = L // (2 ** i_len)
        x_s, attn = run_encoder(x[:, -inp_len:, :], enc_p, n_heads,
                                activation, output_attention)
        x_stack.append(x_s)
        attns.append(attn)
    return jnp.concatenate(x_stack, axis=-2), attns


def init_layer_params(key, d_model, d_ff):
    ks = jax.random.split(key, 10)
    s = 1.0 / math.sqrt(d_model)
    wq = jax.random.normal(ks[0], (d_model, d_model), jnp.float32) * s
    wk = jax.random.normal(ks[1], (d_model, d_model), jnp.float32) * s
    wv = jax.random.normal(ks[2], (d_model, d_model), jnp.float32) * s
    wo = jax.random.normal(ks[3], (d_model, d_model), jnp.float32) * s
    w1 = jax.random.normal(ks[4], (d_model, d_ff), jnp.float32) * s
    w2 = jax.random.normal(ks[5], (d_ff, d_model), jnp.float32) / math.sqrt(d_ff)
    return {
        # MXU matmul weights stored in bf16 (f32 accumulation in-kernel).
        'wqkv': jnp.concatenate([wq, wk, wv], axis=1).astype(jnp.bfloat16),
        'wo': wo.astype(jnp.bfloat16),
        'w1': w1.astype(jnp.bfloat16),
        'w2': w2.astype(jnp.bfloat16),
        # Biases / LayerNorm parameters stay f32 (added after accumulation).
        'bqkv': 0.1 * jax.random.normal(ks[6], (1, 3 * d_model), jnp.float32),
        'bo': 0.1 * jax.random.normal(ks[7], (1, d_model), jnp.float32),
        'b1': 0.1 * jax.random.normal(ks[8], (1, d_ff), jnp.float32),
        'b2': 0.1 * jax.random.normal(ks[9], (1, d_model), jnp.float32),
        'ln1_g': jnp.ones((1, d_model), jnp.float32),
        'ln1_b': jnp.zeros((1, d_model), jnp.float32),
        'ln2_g': jnp.ones((1, d_model), jnp.float32),
        'ln2_b': jnp.zeros((1, d_model), jnp.float32),
    }


def init_encoder_params(key, d_model, d_ff, n_layers):
    keys = jax.random.split(key, n_layers)
    return {
        'layers': [init_layer_params(k, d_model, d_ff) for k in keys],
        'lnf_g': jnp.ones((1, d_model), jnp.float32),
        'lnf_b': jnp.zeros((1, d_model), jnp.float32),
    }


if __name__ == "__main__":
    B, L, D = 2, 16, 32
    n_heads = 4
    d_ff = 64
    e_layers = [2, 1]                      # per-encoder layer counts (InformerStack style)
    inp_lens = list(range(len(e_layers)))  # [0, 1] -> encoders see seq lengths L, L//2

    key = jax.random.PRNGKey(0)
    keys = jax.random.split(key, 1 + len(e_layers))
    x = jax.random.normal(keys[0], (B, L, D), jnp.float32)

    encoders_params = [init_encoder_params(k, D, d_ff, el)
                       for k, el in zip(keys[1:], e_layers)]

    # Default InformerStack config: output_attention=False (attn weights -> None).
    x_stack, attns = encoder_stack_forward(
        x, encoders_params, inp_lens, n_heads,
        activation='gelu', output_attention=False)
    x_stack = jax.block_until_ready(x_stack)
    assert x_stack.shape == (B, L + L // 2, D)
    assert bool(jnp.all(jnp.isfinite(x_stack)))
    assert all(a is None for enc_attns in attns for a in enc_attns)

    # Also exercise the optional bf16 attention-weights path.
    x_stack2, attns2 = encoder_stack_forward(
        x, encoders_params, inp_lens, n_heads,
        activation='gelu', output_attention=True)
    jax.block_until_ready(x_stack2)
    a0 = attns2[0][0]
    a1 = attns2[1][0]
    assert a0.shape == (B, n_heads, L, L) and a0.dtype == jnp.bfloat16
    assert a1.shape == (B, n_heads, L // 2, L // 2)
    row_sums = jnp.sum(a0.astype(jnp.float32), axis=-1)
    assert bool(jnp.all(jnp.abs(row_sums - 1.0) < 0.05))

    print("KERNEL_OK")
</pallas_src>

<mosaic_0001>
module attributes {stable_mosaic.version = 11 : i64} {
  func.func @encoder_layer_kernel(%arg0: i32, %arg1: memref<1x16x32xf32, #tpu.memory_space<vmem>>, %arg2: memref<32x96xbf16, #tpu.memory_space<vmem>>, %arg3: memref<1x96xf32, #tpu.memory_space<vmem>>, %arg4: memref<32x32xbf16, #tpu.memory_space<vmem>>, %arg5: memref<1x32xf32, #tpu.memory_space<vmem>>, %arg6: memref<32x64xbf16, #tpu.memory_space<vmem>>, %arg7: memref<1x64xf32, #tpu.memory_space<vmem>>, %arg8: memref<64x32xbf16, #tpu.memory_space<vmem>>, %arg9: memref<1x32xf32, #tpu.memory_space<vmem>>, %arg10: memref<6x32xf32, #tpu.memory_space<vmem>>, %arg11: memref<1x16x32xf32, #tpu.memory_space<vmem>>) attributes {dimension_semantics = [#tpu.dimension_semantics<parallel>], iteration_bounds = array<i64: 2>, scalar_prefetch = 0 : i64, scratch_operands = 0 : i64, tpu.core_type = #tpu.core_type<tc>, window_params = [{transform_indices = @transform_0, window_bounds = array<i64: 1, 16, 32>}, {pipeline_mode = #tpu.pipeline_mode<synchronous>, transform_indices = @transform_1, window_bounds = array<i64: 32, 96>}, {pipeline_mode = #tpu.pipeline_mode<synchronous>, transform_indices = @transform_2, window_bounds = array<i64: 1, 96>}, {pipeline_mode = #tpu.pipeline_mode<synchronous>, transform_indices = @transform_3, window_bounds = array<i64: 32, 32>}, {pipeline_mode = #tpu.pipeline_mode<synchronous>, transform_indices = @transform_4, window_bounds = array<i64: 1, 32>}, {pipeline_mode = #tpu.pipeline_mode<synchronous>, transform_indices = @transform_5, window_bounds = array<i64: 32, 64>}, {pipeline_mode = #tpu.pipeline_mode<synchronous>, transform_indices = @transform_6, window_bounds = array<i64: 1, 64>}, {pipeline_mode = #tpu.pipeline_mode<synchronous>, transform_indices = @transform_7, window_bounds = array<i64: 64, 32>}, {pipeline_mode = #tpu.pipeline_mode<synchronous>, transform_indices = @transform_8, window_bounds = array<i64: 1, 32>}, {pipeline_mode = #tpu.pipeline_mode<synchronous>, transform_indices = @transform_9, window_bounds = array<i64: 6, 32>}, {transform_indices = @transform_10, window_bounds = array<i64: 1, 16, 32>}]} {
    %c0 = arith.constant 0 : index
    %c0_0 = arith.constant 0 : index
    %c0_1 = arith.constant 0 : index
    %0 = vector.load %arg1[%c0, %c0_0, %c0_1] : memref<1x16x32xf32, #tpu.memory_space<vmem>>, vector<1x16x32xf32>
    %1 = vector.shape_cast %0 : vector<1x16x32xf32> to vector<16x32xf32>
    %2 = arith.truncf %1 : vector<16x32xf32> to vector<16x32xbf16>
    %c0_2 = arith.constant 0 : index
    %c0_3 = arith.constant 0 : index
    %3 = vector.load %arg2[%c0_2, %c0_3] : memref<32x96xbf16, #tpu.memory_space<vmem>>, vector<32x96xbf16>
    %cst = arith.constant dense<0.000000e+00> : vector<16x96xf32>
    %4 = tpu.matmul %2, %3, %cst {dimension_numbers = #tpu.dot_dimension_numbers<[1], [0], [0], [1], [0, 0, 1, 1], [], []>} : vector<16x32xbf16>, vector<32x96xbf16>, vector<16x96xf32> -> vector<16x96xf32>
    %c0_4 = arith.constant 0 : index
    %c0_5 = arith.constant 0 : index
    %5 = vector.load %arg3[%c0_4, %c0_5] : memref<1x96xf32, #tpu.memory_space<vmem>>, vector<1x96xf32>
    %6 = vector.shape_cast %5 : vector<1x96xf32> to vector<96xf32>
    %7 = vector.shape_cast %6 : vector<96xf32> to vector<1x96xf32>
    %8 = vector.broadcast %7 : vector<1x96xf32> to vector<16x96xf32>
    %9 = arith.addf %4, %8 : vector<16x96xf32>
    %10 = vector.extract_strided_slice %9 {offsets = [0, 0], sizes = [16, 32], strides = [1, 1]} : vector<16x96xf32> to vector<16x32xf32>
    %11 = vector.extract_strided_slice %9 {offsets = [0, 32], sizes = [16, 32], strides = [1, 1]} : vector<16x96xf32> to vector<16x32xf32>
    %12 = vector.extract_strided_slice %9 {offsets = [0, 64], sizes = [16, 32], strides = [1, 1]} : vector<16x96xf32> to vector<16x32xf32>
    %13 = vector.extract_strided_slice %10 {offsets = [0, 0], sizes = [16, 8], strides = [1, 1]} : vector<16x32xf32> to vector<16x8xf32>
    %14 = vector.extract_strided_slice %10 {offsets = [0, 8], sizes = [16, 8], strides = [1, 1]} : vector<16x32xf32> to vector<16x8xf32>
    %15 = vector.extract_strided_slice %10 {offsets = [0, 16], sizes = [16, 8], strides = [1, 1]} : vector<16x32xf32> to vector<16x8xf32>
    %16 = vector.extract_strided_slice %10 {offsets = [0, 24], sizes = [16, 8], strides = [1, 1]} : vector<16x32xf32> to vector<16x8xf32>
    %17 = vector.shape_cast %13 : vector<16x8xf32> to vector<1x16x8xf32>
    %18 = vector.shape_cast %14 : vector<16x8xf32> to vector<1x16x8xf32>
    %19 = vector.shape_cast %15 : vector<16x8xf32> to vector<1x16x8xf32>
    %20 = vector.shape_cast %16 : vector<16x8xf32> to vector<1x16x8xf32>
    %21 = tpu.concatenate %17, %18, %19, %20 in 0 : vector<1x16x8xf32>, vector<1x16x8xf32>, vector<1x16x8xf32>, vector<1x16x8xf32> -> vector<4x16x8xf32>
    %22 = arith.truncf %21 : vector<4x16x8xf32> to vector<4x16x8xbf16>
    %23 = vector.extract_strided_slice %11 {offsets = [0, 0], sizes = [16, 8], strides = [1, 1]} : vector<16x32xf32> to vector<16x8xf32>
    %24 = vector.extract_strided_slice %11 {offsets = [0, 8], sizes = [16, 8], strides = [1, 1]} : vector<16x32xf32> to vector<16x8xf32>
    %25 = vector.extract_strided_slice %11 {offsets = [0, 16], sizes = [16, 8], strides = [1, 1]} : vector<16x32xf32> to vector<16x8xf32>
    %26 = vector.extract_strided_slice %11 {offsets = [0, 24], sizes = [16, 8], strides = [1, 1]} : vector<16x32xf32> to vector<16x8xf32>
    %27 = vector.shape_cast %23 : vector<16x8xf32> to vector<1x16x8xf32>
    %28 = vector.shape_cast %24 : vector<16x8xf32> to vector<1x16x8xf32>
    %29 = vector.shape_cast %25 : vector<16x8xf32> to vector<1x16x8xf32>
    %30 = vector.shape_cast %26 : vector<16x8xf32> to vector<1x16x8xf32>
    %31 = tpu.concatenate %27, %28, %29, %30 in 0 : vector<1x16x8xf32>, vector<1x16x8xf32>, vector<1x16x8xf32>, vector<1x16x8xf32> -> vector<4x16x8xf32>
    %32 = arith.truncf %31 : vector<4x16x8xf32> to vector<4x16x8xbf16>
    %33 = vector.extract_strided_slice %12 {offsets = [0, 0], sizes = [16, 8], strides = [1, 1]} : vector<16x32xf32> to vector<16x8xf32>
    %34 = vector.extract_strided_slice %12 {offsets = [0, 8], sizes = [16, 8], strides = [1, 1]} : vector<16x32xf32> to vector<16x8xf32>
    %35 = vector.extract_strided_slice %12 {offsets = [0, 16], sizes = [16, 8], strides = [1, 1]} : vector<16x32xf32> to vector<16x8xf32>
    %36 = vector.extract_strided_slice %12 {offsets = [0, 24], sizes = [16, 8], strides = [1, 1]} : vector<16x32xf32> to vector<16x8xf32>
    %37 = vector.shape_cast %33 : vector<16x8xf32> to vector<1x16x8xf32>
    %38 = vector.shape_cast %34 : vector<16x8xf32> to vector<1x16x8xf32>
    %39 = vector.shape_cast %35 : vector<16x8xf32> to vector<1x16x8xf32>
    %40 = vector.shape_cast %36 : vector<16x8xf32> to vector<1x16x8xf32>
    %41 = tpu.concatenate %37, %38, %39, %40 in 0 : vector<1x16x8xf32>, vector<1x16x8xf32>, vector<1x16x8xf32>, vector<1x16x8xf32> -> vector<4x16x8xf32>
    %42 = arith.truncf %41 : vector<4x16x8xf32> to vector<4x16x8xbf16>
    "tpu.trace_start"() <{level = 10 : i32, message = "hld,hmd->hlm"}> : () -> ()
    %cst_6 = arith.constant dense<0.000000e+00> : vector<4x16x16xf32>
    %43 = tpu.matmul %22, %32, %cst_6 {dimension_numbers = #tpu.dot_dimension_numbers<[2], [2], [1], [1], [0, 0, 0, 1, 1, 1], [0], [0]>} : vector<4x16x8xbf16>, vector<4x16x8xbf16>, vector<4x16x16xf32> -> vector<4x16x16xf32>
    "tpu.trace_stop"() : () -> ()
    %cst_7 = arith.constant 0.353553385 : f32
    %44 = vector.broadcast %cst_7 : f32 to vector<4x16x16xf32>
    %45 = arith.mulf %43, %44 : vector<4x16x16xf32>
    %cst_8 = arith.constant dense<0xFF800000> : vector<4x16xf32>
    %46 = vector.multi_reduction <maximumf>, %45, %cst_8 [2] : vector<4x16x16xf32> to vector<4x16xf32>
    %47 = vector.shape_cast %46 : vector<4x16xf32> to vector<4x16x1xf32>
    %48 = vector.broadcast %47 : vector<4x16x1xf32> to vector<4x16x16xf32>
    %49 = arith.subf %45, %48 : vector<4x16x16xf32>
    %50 = math.exp %49 : vector<4x16x16xf32>
    %cst_9 = arith.constant dense<0.000000e+00> : vector<4x16xf32>
    %51 = vector.multi_reduction <add>, %50, %cst_9 [2] : vector<4x16x16xf32> to vector<4x16xf32>
    %52 = vector.shape_cast %51 : vector<4x16xf32> to vector<4x16x1xf32>
    %53 = tpu.reciprocal %52 {approx = true} : vector<4x16x1xf32> -> vector<4x16x1xf32>
    %54 = vector.broadcast %53 : vector<4x16x1xf32> to vector<4x16x16xf32>
    %55 = arith.mulf %50, %54 : vector<4x16x16xf32>
    %56 = arith.truncf %55 : vector<4x16x16xf32> to vector<4x16x16xbf16>
    "tpu.trace_start"() <{level = 10 : i32, message = "hlm,hmd->hld"}> : () -> ()
    %cst_10 = arith.constant dense<0.000000e+00> : vector<4x16x8xf32>
    %57 = tpu.matmul %56, %42, %cst_10 {dimension_numbers = #tpu.dot_dimension_numbers<[2], [1], [1], [2], [0, 0, 0, 1, 1, 2], [0], [0]>} : vector<4x16x16xbf16>, vector<4x16x8xbf16>, vector<4x16x8xf32> -> vector<4x16x8xf32>
    "tpu.trace_stop"() : () -> ()
    %58 = vector.extract_strided_slice %57 {offsets = [0, 0, 0], sizes = [1, 16, 8], strides = [1, 1, 1]} : vector<4x16x8xf32> to vector<1x16x8xf32>
    %59 = vector.shape_cast %58 : vector<1x16x8xf32> to vector<16x8xf32>
    %60 = vector.extract_strided_slice %57 {offsets = [1, 0, 0], sizes = [1, 16, 8], strides = [1, 1, 1]} : vector<4x16x8xf32> to vector<1x16x8xf32>
    %61 = vector.shape_cast %60 : vector<1x16x8xf32> to vector<16x8xf32>
    %62 = vector.extract_strided_slice %57 {offsets = [2, 0, 0], sizes = [1, 16, 8], strides = [1, 1, 1]} : vector<4x16x8xf32> to vector<1x16x8xf32>
    %63 = vector.shape_cast %62 : vector<1x16x8xf32> to vector<16x8xf32>
    %64 = vector.extract_strided_slice %57 {offsets = [3, 0, 0], sizes = [1, 16, 8], strides = [1, 1, 1]} : vector<4x16x8xf32> to vector<1x16x8xf32>
    %65 = vector.shape_cast %64 : vector<1x16x8xf32> to vector<16x8xf32>
    %66 = tpu.concatenate %59, %61, %63, %65 in 1 : vector<16x8xf32>, vector<16x8xf32>, vector<16x8xf32>, vector<16x8xf32> -> vector<16x32xf32>
    %67 = arith.truncf %66 : vector<16x32xf32> to vector<16x32xbf16>
    %c0_11 = arith.constant 0 : index
    %c0_12 = arith.constant 0 : index
    %68 = vector.load %arg4[%c0_11, %c0_12] : memref<32x32xbf16, #tpu.memory_space<vmem>>, vector<32x32xbf16>
    %cst_13 = arith.constant dense<0.000000e+00> : vector<16x32xf32>
    %69 = tpu.matmul %67, %68, %cst_13 {dimension_numbers = #tpu.dot_dimension_numbers<[1], [0], [0], [1], [0, 0, 1, 1], [], []>} : vector<16x32xbf16>, vector<32x32xbf16>, vector<16x32xf32> -> vector<16x32xf32>
    %c0_14 = arith.constant 0 : index
    %c0_15 = arith.constant 0 : index
    %70 = vector.load %arg5[%c0_14, %c0_15] : memref<1x32xf32, #tpu.memory_space<vmem>>, vector<1x32xf32>
    %71 = vector.shape_cast %70 : vector<1x32xf32> to vector<32xf32>
    %72 = vector.shape_cast %71 : vector<32xf32> to vector<1x32xf32>
    %73 = vector.broadcast %72 : vector<1x32xf32> to vector<16x32xf32>
    %74 = arith.addf %69, %73 : vector<16x32xf32>
    %75 = arith.addf %1, %74 : vector<16x32xf32>
    %c0_16 = arith.constant 0 : index
    %c0_17 = arith.constant 0 : index
    %76 = vector.load %arg10[%c0_16, %c0_17] : memref<6x32xf32, #tpu.memory_space<vmem>>, vector<1x32xf32>
    %77 = vector.shape_cast %76 : vector<1x32xf32> to vector<32xf32>
    %c1 = arith.constant 1 : index
    %c0_18 = arith.constant 0 : index
    %78 = vector.load %arg10[%c1, %c0_18] : memref<6x32xf32, #tpu.memory_space<vmem>>, vector<1x32xf32>
    %79 = vector.shape_cast %78 : vector<1x32xf32> to vector<32xf32>
    %cst_19 = arith.constant dense<0.000000e+00> : vector<16xf32>
    %80 = vector.multi_reduction <add>, %75, %cst_19 [1] : vector<16x32xf32> to vector<16xf32>
    %81 = vector.shape_cast %80 : vector<16xf32> to vector<16x1xf32>
    %cst_20 = arith.constant 3.200000e+01 : f32
    %82 = vector.broadcast %cst_20 : f32 to vector<16x1xf32>
    %83 = arith.divf %81, %82 : vector<16x1xf32>
    %84 = vector.broadcast %83 : vector<16x1xf32> to vector<16x32xf32>
    %85 = arith.subf %75, %84 : vector<16x32xf32>
    %86 = arith.mulf %85, %85 : vector<16x32xf32>
    %cst_21 = arith.constant dense<0.000000e+00> : vector<16xf32>
    %87 = vector.multi_reduction <add>, %86, %cst_21 [1] : vector<16x32xf32> to vector<16xf32>
    %88 = vector.shape_cast %87 : vector<16xf32> to vector<16x1xf32>
    %cst_22 = arith.constant 3.200000e+01 : f32
    %89 = vector.broadcast %cst_22 : f32 to vector<16x1xf32>
    %90 = arith.divf %88, %89 : vector<16x1xf32>
    %91 = vector.broadcast %83 : vector<16x1xf32> to vector<16x32xf32>
    %92 = arith.subf %75, %91 : vector<16x32xf32>
    %cst_23 = arith.constant 9.99999974E-6 : f32
    %93 = vector.broadcast %cst_23 : f32 to vector<16x1xf32>
    %94 = arith.addf %90, %93 : vector<16x1xf32>
    %95 = math.rsqrt %94 : vector<16x1xf32>
    %96 = vector.broadcast %95 : vector<16x1xf32> to vector<16x32xf32>
    %97 = arith.mulf %92, %96 : vector<16x32xf32>
    %98 = vector.shape_cast %77 : vector<32xf32> to vector<1x32xf32>
    %99 = vector.broadcast %98 : vector<1x32xf32> to vector<16x32xf32>
    %100 = arith.mulf %97, %99 : vector<16x32xf32>
    %101 = vector.shape_cast %79 : vector<32xf32> to vector<1x32xf32>
    %102 = vector.broadcast %101 : vector<1x32xf32> to vector<16x32xf32>
    %103 = arith.addf %100, %102 : vector<16x32xf32>
    %104 = arith.truncf %103 : vector<16x32xf32> to vector<16x32xbf16>
    %c0_24 = arith.constant 0 : index
    %c0_25 = arith.constant 0 : index
    %105 = vector.load %arg6[%c0_24, %c0_25] : memref<32x64xbf16, #tpu.memory_space<vmem>>, vector<32x64xbf16>
    %cst_26 = arith.constant dense<0.000000e+00> : vector<16x64xf32>
    %106 = tpu.matmul %104, %105, %cst_26 {dimension_numbers = #tpu.dot_dimension_numbers<[1], [0], [0], [1], [0, 0, 1, 1], [], []>} : vector<16x32xbf16>, vector<32x64xbf16>, vector<16x64xf32> -> vector<16x64xf32>
    %c0_27 = arith.constant 0 : index
    %c0_28 = arith.constant 0 : index
    %107 = vector.load %arg7[%c0_27, %c0_28] : memref<1x64xf32, #tpu.memory_space<vmem>>, vector<1x64xf32>
    %108 = vector.shape_cast %107 : vector<1x64xf32> to vector<64xf32>
    %109 = vector.shape_cast %108 : vector<64xf32> to vector<1x64xf32>
    %110 = vector.broadcast %109 : vector<1x64xf32> to vector<16x64xf32>
    %111 = arith.addf %106, %110 : vector<16x64xf32>
    %112 = arith.mulf %111, %111 : vector<16x64xf32>
    %113 = arith.mulf %111, %112 : vector<16x64xf32>
    %cst_29 = arith.constant 4.471500e-02 : f32
    %114 = vector.broadcast %cst_29 : f32 to vector<16x64xf32>
    %115 = arith.mulf %114, %113 : vector<16x64xf32>
    %116 = arith.addf %111, %115 : vector<16x64xf32>
    %cst_30 = arith.constant 0.797884583 : f32
    %117 = vector.broadcast %cst_30 : f32 to vector<16x64xf32>
    %118 = arith.mulf %117, %116 : vector<16x64xf32>
    %119 = math.tanh %118 : vector<16x64xf32>
    %cst_31 = arith.constant 1.000000e+00 : f32
    %120 = vector.broadcast %cst_31 : f32 to vector<16x64xf32>
    %121 = arith.addf %120, %119 : vector<16x64xf32>
    %cst_32 = arith.constant 5.000000e-01 : f32
    %122 = vector.broadcast %cst_32 : f32 to vector<16x64xf32>
    %123 = arith.mulf %122, %121 : vector<16x64xf32>
    %124 = arith.mulf %111, %123 : vector<16x64xf32>
    %125 = arith.truncf %124 : vector<16x64xf32> to vector<16x64xbf16>
    %c0_33 = arith.constant 0 : index
    %c0_34 = arith.constant 0 : index
    %126 = vector.load %arg8[%c0_33, %c0_34] : memref<64x32xbf16, #tpu.memory_space<vmem>>, vector<64x32xbf16>
    %cst_35 = arith.constant dense<0.000000e+00> : vector<16x32xf32>
    %127 = tpu.matmul %125, %126, %cst_35 {dimension_numbers = #tpu.dot_dimension_numbers<[1], [0], [0], [1], [0, 0, 1, 1], [], []>} : vector<16x64xbf16>, vector<64x32xbf16>, vector<16x32xf32> -> vector<16x32xf32>
    %c0_36 = arith.constant 0 : index
    %c0_37 = arith.constant 0 : index
    %128 = vector.load %arg9[%c0_36, %c0_37] : memref<1x32xf32, #tpu.memory_space<vmem>>, vector<1x32xf32>
    %129 = vector.shape_cast %128 : vector<1x32xf32> to vector<32xf32>
    %130 = vector.shape_cast %129 : vector<32xf32> to vector<1x32xf32>
    %131 = vector.broadcast %130 : vector<1x32xf32> to vector<16x32xf32>
    %132 = arith.addf %127, %131 : vector<16x32xf32>
    %133 = arith.addf %103, %132 : vector<16x32xf32>
    %c2 = arith.constant 2 : index
    %c0_38 = arith.constant 0 : index
    %134 = vector.load %arg10[%c2, %c0_38] : memref<6x32xf32, #tpu.memory_space<vmem>>, vector<1x32xf32>
    %135 = vector.shape_cast %134 : vector<1x32xf32> to vector<32xf32>
    %c3 = arith.constant 3 : index
    %c0_39 = arith.constant 0 : index
    %136 = vector.load %arg10[%c3, %c0_39] : memref<6x32xf32, #tpu.memory_space<vmem>>, vector<1x32xf32>
    %137 = vector.shape_cast %136 : vector<1x32xf32> to vector<32xf32>
    %cst_40 = arith.constant dense<0.000000e+00> : vector<16xf32>
    %138 = vector.multi_reduction <add>, %133, %cst_40 [1] : vector<16x32xf32> to vector<16xf32>
    %139 = vector.shape_cast %138 : vector<16xf32> to vector<16x1xf32>
    %cst_41 = arith.constant 3.200000e+01 : f32
    %140 = vector.broadcast %cst_41 : f32 to vector<16x1xf32>
    %141 = arith.divf %139, %140 : vector<16x1xf32>
    %142 = vector.broadcast %141 : vector<16x1xf32> to vector<16x32xf32>
    %143 = arith.subf %133, %142 : vector<16x32xf32>
    %144 = arith.mulf %143, %143 : vector<16x32xf32>
    %cst_42 = arith.constant dense<0.000000e+00> : vector<16xf32>
    %145 = vector.multi_reduction <add>, %144, %cst_42 [1] : vector<16x32xf32> to vector<16xf32>
    %146 = vector.shape_cast %145 : vector<16xf32> to vector<16x1xf32>
    %cst_43 = arith.constant 3.200000e+01 : f32
    %147 = vector.broadcast %cst_43 : f32 to vector<16x1xf32>
    %148 = arith.divf %146, %147 : vector<16x1xf32>
    %149 = vector.broadcast %141 : vector<16x1xf32> to vector<16x32xf32>
    %150 = arith.subf %133, %149 : vector<16x32xf32>
    %cst_44 = arith.constant 9.99999974E-6 : f32
    %151 = vector.broadcast %cst_44 : f32 to vector<16x1xf32>
    %152 = arith.addf %148, %151 : vector<16x1xf32>
    %153 = math.rsqrt %152 : vector<16x1xf32>
    %154 = vector.broadcast %153 : vector<16x1xf32> to vector<16x32xf32>
    %155 = arith.mulf %150, %154 : vector<16x32xf32>
    %156 = vector.shape_cast %135 : vector<32xf32> to vector<1x32xf32>
    %157 = vector.broadcast %156 : vector<1x32xf32> to vector<16x32xf32>
    %158 = arith.mulf %155, %157 : vector<16x32xf32>
    %159 = vector.shape_cast %137 : vector<32xf32> to vector<1x32xf32>
    %160 = vector.broadcast %159 : vector<1x32xf32> to vector<16x32xf32>
    %161 = arith.addf %158, %160 : vector<16x32xf32>
    %c0_45 = arith.constant 0 : index
    %c0_46 = arith.constant 0 : index
    %c0_47 = arith.constant 0 : index
    %162 = vector.load %arg11[%c0_45, %c0_46, %c0_47] : memref<1x16x32xf32, #tpu.memory_space<vmem>>, vector<1x16x32xf32>
    %163 = vector.shape_cast %162 : vector<1x16x32xf32> to vector<16x32xf32>
    %164 = vector.shape_cast %161 : vector<16x32xf32> to vector<1x16x32xf32>
    tpu.vector_store %arg11[%c0_45, %c0_46, %c0_47], %164 {strides = array<i32>} : memref<1x16x32xf32, #tpu.memory_space<vmem>>, vector<1x16x32xf32>,
    return
  }
  func.func @transform_0(%arg0: i32) -> (i32, i32, i32) {
    %c0_i32 = arith.constant 0 : i32
    %c0_i32_0 = arith.constant 0 : i32
    %c0_i32_1 = arith.constant 0 : i32
    return %arg0, %c0_i32, %c0_i32_0 : i32, i32, i32
  }
  func.func @transform_1(%arg0: i32) -> (i32, i32) {
    %c0_i32 = arith.constant 0 : i32
    %c0_i32_0 = arith.constant 0 : i32
    %c0_i32_1 = arith.constant 0 : i32
    return %c0_i32, %c0_i32_0 : i32, i32
  }
  func.func @transform_2(%arg0: i32) -> (i32, i32) {
    %c0_i32 = arith.constant 0 : i32
    %c0_i32_0 = arith.constant 0 : i32
    %c0_i32_1 = arith.constant 0 : i32
    return %c0_i32, %c0_i32_0 : i32, i32
  }
  func.func @transform_3(%arg0: i32) -> (i32, i32) {
    %c0_i32 = arith.constant 0 : i32
    %c0_i32_0 = arith.constant 0 : i32
    %c0_i32_1 = arith.constant 0 : i32
    return %c0_i32, %c0_i32_0 : i32, i32
  }
  func.func @transform_4(%arg0: i32) -> (i32, i32) {
    %c0_i32 = arith.constant 0 : i32
    %c0_i32_0 = arith.constant 0 : i32
    %c0_i32_1 = arith.constant 0 : i32
    return %c0_i32, %c0_i32_0 : i32, i32
  }
  func.func @transform_5(%arg0: i32) -> (i32, i32) {
    %c0_i32 = arith.constant 0 : i32
    %c0_i32_0 = arith.constant 0 : i32
    %c0_i32_1 = arith.constant 0 : i32
    return %c0_i32, %c0_i32_0 : i32, i32
  }
  func.func @transform_6(%arg0: i32) -> (i32, i32) {
    %c0_i32 = arith.constant 0 : i32
    %c0_i32_0 = arith.constant 0 : i32
    %c0_i32_1 = arith.constant 0 : i32
    return %c0_i32, %c0_i32_0 : i32, i32
  }
  func.func @transform_7(%arg0: i32) -> (i32, i32) {
    %c0_i32 = arith.constant 0 : i32
    %c0_i32_0 = arith.constant 0 : i32
    %c0_i32_1 = arith.constant 0 : i32
    return %c0_i32, %c0_i32_0 : i32, i32
  }
  func.func @transform_8(%arg0: i32) -> (i32, i32) {
    %c0_i32 = arith.constant 0 : i32
    %c0_i32_0 = arith.constant 0 : i32
    %c0_i32_1 = arith.constant 0 : i32
    return %c0_i32, %c0_i32_0 : i32, i32
  }
  func.func @transform_9(%arg0: i32) -> (i32, i32) {
    %c0_i32 = arith.constant 0 : i32
    %c0_i32_0 = arith.constant 0 : i32
    %c0_i32_1 = arith.constant 0 : i32
    return %c0_i32, %c0_i32_0 : i32, i32
  }
  func.func @transform_10(%arg0: i32) -> (i32, i32, i32) {
    %c0_i32 = arith.constant 0 : i32
    %c0_i32_0 = arith.constant 0 : i32
    %c0_i32_1 = arith.constant 0 : i32
    return %arg0, %c0_i32, %c0_i32_0 : i32, i32, i32
  }
}

</mosaic_0001>

<bundles_post_ra>
// kernel: tpu_custom_call.1
= control target key start
LH: loop header
LB: loop body
LE: loop exit
PB: predicated region body
PF: predicated region fallthrough
CT: control target
= control target key end

     0   :  { %15 = vsyncpa [#allocation3], 0  ;;  %s2372_s0 = inlined_call_operand.vmem [shape: f32[2,16,32], index: 0, kind: input, shape index: {}]   ;;  %s2373_s1 = inlined_call_operand.vmem [shape: bf16[32,96], index: 1, kind: input, shape index: {}]   ;;  %s2374_s2 = inlined_call_operand.vmem [shape: f32[1,96], index: 2, kind: input, shape index: {}]   ;;  %s2375_s3 = inlined_call_operand.hbm [shape: bf16[32,32], index: 3, kind: input, shape index: {}]   ;;  %s2376_s4 = inlined_call_operand.vmem [shape: f32[1,32], index: 4, kind: input, shape index: {}]   ;;  %s2377_s5 = inlined_call_operand.hbm [shape: bf16[32,64], index: 5, kind: input, shape index: {}]   ;;  %s2378_s6 = inlined_call_operand.hbm [shape: f32[1,64], index: 6, kind: input, shape index: {}]   ;;  %s2379_s7 = inlined_call_operand.vmem [shape: bf16[64,32], index: 7, kind: input, shape index: {}]   ;;  %s2380_s8 = inlined_call_operand.vmem [shape: f32[1,32], index: 8, kind: input, shape index: {}]   ;;  %s2381_s9 = inlined_call_operand.vmem [shape: f32[6,32], index: 9, kind: input, shape index: {}]   ;;  %s2382_s10 = inlined_call_operand.hbm [shape: f32[2,16,32], index: 10, kind: output, shape index: {}]  }
   0x1   :  { %16 = vsyncpa [#allocation6], 0 }
   0x2   :  { %17 = vsyncpa [#allocation4], 0 }
   0x3   :  { %19 = vsyncpa [#allocation4 + $0x1], 0  ;;  %s2009_s13 = smov 0   ;;  %s2011_s14 = smov 0  }
   0x4   :  { %s2013_s15 = smov 0   ;;  %s2015_s16 = smov 0  }
   0x5 LB: > { %2392 = sst [smem:[#allocation12_spill]] %s1923_s13  ;;  %s2030_s17 = sadd.s32 4294967295, %s1935_s16   ;;  %s1935_s16 = sphi %s2015_s16, %s2413_s16   ;;  %s1931_s15 = sphi %s2013_s15, %s2418_s15   ;;  %s1927_s14 = sphi %s2011_s14, %s2417_s14   ;;  %s1923_s13 = sphi %s2009_s13, %s2416_s13  }
   0x6   : > { %2393 = sst [smem:[#allocation13_spill]] %s1931_s15  ;;  %s1450_s18 = sadd.s32 4294967294, %s1935_s16  }
   0x7   : > { %2394 = sst [smem:[#allocation14_spill]] %s1935_s16  ;;  %s2034_s19 = sadd.s32 1, %s1935_s16  }
   0x8   : > { %2395 = sst [smem:[#allocation15_spill]] %s2034_s19  ;;  %s247_s20 = sadd.s32 1, %s1931_s15 }
   0x9   : > { %s244_s21 = ssub.s32 %s1935_s16, %s2034_s19  ;;  %p257_p0 = scmp.ne.s32.totalorder %s1931_s15, %s1927_s14 }
   0xa   : > { %p245_p1 = scmp.eq.s32.totalorder %s244_s21, 0  ;;  %p258_p2 = scmp.eq.s32.totalorder %s2030_s17, 1 }
   0xb   : > { %p263_p3 = scmp.ne.s32.totalorder %s1927_s14, %s1923_s13  ;;  %p264_p4 = scmp.eq.s32.totalorder %s1450_s18, 1 }
   0xc   : > { %s2045_s22 = scalar_select %p245_p1, %s1931_s15, %s247_s20  }
   0xd   : > { %p2047_p5 = por %p258_p2, %p257_p0  ;;  %p2051_p6 = por %p264_p4, %p263_p3 }
   0xe   : > { %2396 = sst [smem:[#allocation16_spill]] %s2045_s22  ;;  %p1451_p7 = scmp.ge.s32.totalorder %s1935_s16, 1 }
   0xf   : > { %s2397_s23 = scalar_select %p2047_p5, 1, 0 }
  0x10   : > { %s2398_s24 = scalar_select %p2051_p6, 1, 0 }
  0x11   : > { %p271_p8 = scmp.lt.s32.totalorder %s1935_s16, 3  ;;  %p2384_p9 = scmp.eq.s32.totalorder %s2030_s17, 0 }
  0x12   : > { %2399 = sst [smem:[#allocation17_spill]] %s2398_s24  ;;  %s1937_s26 = smov [#allocation5]  }
  0x13   : > { %p2058_p10 = pnand %p1451_p7, %p271_p8  ;;  %s305_s27 = sshll.u32 %s1937_s26, 4  ;;  %s2064_s27 = int_to_ptr.vmem [resolvable:$true] %s305_s27 }
  0x14   : > { %s1938_s29 = smov [#allocation2]   ;;  %s1939_s11 = smov [#allocation7]  }
  0x15   : > { %s2400_s25 = scalar_select %p2058_p10, 1, 0 }
  0x16   : > { %p1628_p11 = pneg %p2058_p10  ;;  %s289_s30 = sshll.u32 %s1938_s29, 4  ;;  %s2072_s30 = int_to_ptr.vmem [resolvable:$true] %s289_s30 }
  0x17   : > { %s2074_s12 = sshll.u32 %s1939_s11, 4  ;;  %s1781_s21 = scalar_lea.hbm %s2377_s5, 256  ;;  %s320_s12 = int_to_ptr.vmem [resolvable:$true] %s2074_s12 }
  0x18   : > { %p2068_p12 = pnand %p2384_p9, %p1628_p11  ;;  %p1782_p13 = scmp.ne.s32.totalorder %s2377_s5, %s1781_s21 }
  0x19   : > { %p1788_p3 = scmp.lt.u32.totalorder %s1781_s21, %s2377_s5 }
  0x1a   : > { %p2084_p0 = pneg %p2068_p12 }
  0x1c   : > { %p1784_p1 = pnand %p2084_p0, %p1782_p13 }
  0x1e   : > { %p1785_p2 = pneg %p1784_p1 }
  0x20   : > { %p1790_p4 = pnand %p1788_p3, %p1785_p2 }
  0x22   : > { %1793 = shalt.err (!%p1790_p4)
}
  0x23   : > { %s1794_s22 = scalar_lea.vmem %s2064_s27, 256  ;;  %p1802_p9 = scmp.lt.s32.totalorder %s2064_s27, %s2064_s27 }
  0x24   : > { %p1795_p7 = scmp.ne.s32.totalorder %s2064_s27, %s1794_s22  ;;  %p1803_p6 = scmp.lt.s32.totalorder %s1794_s22, %s1794_s22 }
  0x26   : > { %p1797_p8 = pnand %p1795_p7, %p2084_p0  ;;  %p1804_p13 = por %p1803_p6, %p1802_p9 }
  0x28   : > { %p1798_p11 = pneg %p1797_p8 }
  0x2a   : > { %p1805_p1 = pnand %p1804_p13, %p1798_p11 }
  0x2c   : > { %1808 = shalt.err (!%p1805_p1)
}
  0x2d   : > { %s1940_s18 = smov 64   ;;  %s1941_s20 = smov 4  }
  0x2e   : > { %1634 = dma.hbm_to_vmem [thread:$0]  (!%p2068_p12), %s2377_s5, 256, %s2064_s27, [#allocation6], %s1940_s18, %s1940_s18, %s1941_s20  }
  0x2f   : > { %s1809_s19 = scalar_lea.hbm %s2375_s3, 256 }
  0x30   : > { %p1810_p6 = scmp.ne.s32.totalorder %s2375_s3, %s1809_s19  ;;  %p1816_p3 = scmp.lt.u32.totalorder %s1809_s19, %s2375_s3 }
  0x32   : > { %p1812_p9 = pnand %p1810_p6, %p2084_p0 }
  0x34   : > { %p1813_p2 = pneg %p1812_p9 }
  0x36   : > { %p1818_p4 = pnand %p1816_p3, %p1813_p2 }
  0x38   : > { %1821 = shalt.err (!%p1818_p4)
}
  0x39   : > { %s1822_s27 = scalar_lea.vmem %s2072_s30, 256  ;;  %p1830_p13 = scmp.lt.s32.totalorder %s2072_s30, %s2072_s30 }
  0x3a   : > { %p1823_p7 = scmp.ne.s32.totalorder %s2072_s30, %s1822_s27  ;;  %p1831_p1 = scmp.lt.s32.totalorder %s1822_s27, %s1822_s27 }
  0x3c   : > { %p1825_p8 = pnand %p1823_p7, %p2084_p0  ;;  %p1832_p6 = por %p1831_p1, %p1830_p13 }
  0x3e   : > { %p1826_p11 = pneg %p1825_p8 }
  0x40   : > { %p1833_p9 = pnand %p1832_p6, %p1826_p11 }
  0x42   : > { %1836 = shalt.err (!%p1833_p9)
}
  0x43   : > { %1631 = dma.hbm_to_vmem [thread:$0]  (!%p2068_p12), %s2375_s3, 256, %s2072_s30, [#allocation3], %s1940_s18, %s1940_s18, %s1941_s20  }
  0x44   : > { %s1837_s21 = scalar_lea.hbm %s2378_s6, 16 }
  0x45   : > { %p1838_p2 = scmp.ne.s32.totalorder %s2378_s6, %s1837_s21  ;;  %p1844_p7 = scmp.lt.u32.totalorder %s1837_s21, %s2378_s6 }
  0x47   : > { %p1840_p3 = pnand %p1838_p2, %p2084_p0 }
  0x49   : > { %p1841_p4 = pneg %p1840_p3 }
  0x4b   : > { %p1846_p8 = pnand %p1844_p7, %p1841_p4 }
  0x4d   : > { %1849 = shalt.err (!%p1846_p8)
}
  0x4e   : > { %s1850_s27 = scalar_lea.vmem %s320_s12, 16  ;;  %s1857_s30 = scalar_lea.vmem %s320_s12, 32 }
  0x4f   : > { %p1851_p11 = scmp.ne.s32.totalorder %s320_s12, %s1850_s27  ;;  %p1858_p6 = scmp.lt.s32.totalorder %s320_s12, %s320_s12 }
  0x50   : > { %p1859_p9 = scmp.lt.s32.totalorder %s1857_s30, %s1850_s27 }
  0x51   : > { %p1853_p13 = pnand %p1851_p11, %p2084_p0 }
  0x52   : > { %p1860_p5 = por %p1859_p9, %p1858_p6 }
  0x53   : > { %p1854_p1 = pneg %p1853_p13 }
  0x55   : > { %p1861_p10 = pnand %p1860_p5, %p1854_p1 }
  0x57   : > { %1864 = shalt.err (!%p1861_p10)
}
  0x58   : > { %1637 = dma.hbm_to_vmem [thread:$0]  (!%p2068_p12), %s2378_s6, 16, %s320_s12, [#allocation6]  }
  0x59   : > { %p2403_p2 = scmp.ne.s32.totalorder %s2400_s25, 0 }
  0x5a   : > { %p2404_p3 = scmp.eq.s32.totalorder (!%p2403_p2), %s2030_s17, 0 }
  0x5b   : > { %349 = sbr.rel (%p2403_p2) target bundleno = 2775 (0xad7), region = 60 }
  0x62   : > { %1910 = dma.done.wait (%p2404_p3), [#allocation3], 256   ;;  %p2405_p0 = pmov %p2404_p3 }
  0x64   : > { %1912 = vsyncadd (%p2405_p0), [#allocation3], 4294967040  ;;  %p2406_p4 = pmov %p2405_p0 }
  0x65   : > { %p2407_p5 = pmov %p2405_p0 }
  0x66   : > { %1914 = dma.done.wait (%p2406_p4), [#allocation6], 272  }
  0x67   : > { %1916 = vsyncadd (%p2407_p5), [#allocation6], 4294967024  ;;  %p395_p10 = scmp.lt.s32.totalorder %s2030_s17, 1  ;;  %v1942_v0 = vmov 0.0   ;;  %vm1943_vm0 = vmmov 0   ;;  %v1727_v1 = vld [vmem:[%s2373_s1] sm:$0xff]  }
  0x68   : > { %1530 = vmatprep.subr.bf16.mxu0 %v1942_v0  ;;  %1534 = vmatprep.mubr.msk.bf16.mxu0 %vm1943_vm0, %v1942_v0  ;;  %v1728_v2 = vld [vmem:[%s2373_s1 + $0x8] sm:$0xff]   ;;  %vm427_vm1 = vcmask 261120   ;;  %v1463_v6 = vld [vmem:[%s2374_s2] ss:$0 sm:$0xff]  ;;  %s1944_s11 = smov 104   ;;  %s1945_s22 = smov 120  }
  0x69   : > { %s396_s15 = scalar_select %p395_p10, %s2030_s17, 1  ;;  %1538 = vmatprep.subr.bf16.mxu1 %v1942_v0  ;;  %1540 = vmatprep.mubr.msk.bf16.mxu1 %vm1943_vm0, %v1942_v0  ;;  %vm499_vm2 = vcmask 64512   ;;  %vm705_vm3 = vcmask 130048   ;;  %vm1014_vm4 = vcmask 195584   ;;  %vm1254_vm5 = vcmask 523264  }
  0x6a   : > { %1531 = vmatpush3.bf16.msra.mxu0 %v1727_v1  ;;  %s1946_s27 = smov 112   ;;  %s1947_s30 = smov 96  }
  0x6b   : > { %s1498_s25 = sshll.u32 %s396_s15, 4  ;;  %1532 = vmatprep.subr.bf16.mxu0 %v1942_v0  ;;  %s1948_s18 = smov 64  }
  0x6c   : > { %s399_s13 = scalar_lea.vmem %s2372_s0, %s1498_s25  ;;  %s1949_s20 = smov 8  }
  0x6d   : > { %v2174_v3 = vld [vmem:[%s399_s13] sm:$0xff]  ;;  %v2176_v4 = vld [vmem:[%s399_s13 + $0x8] sm:$0xff]  ;;  %s1950_s15 = smov 16   ;;  %s1951_s25 = smov 24  }
  0x6e   : > { %v403_v5 = vpack.c.bf16 %v2176_v4, %v2174_v3  ;;  %1533 = vmatpush3.bf16.msra.mxu0 %v1728_v2  ;;  %s392_s28 = sand.u32 1, %s1927_s14   ;;  %s1499_s21 = sshll.u32 %s2030_s17, 8 }
  0x6f   : > { %1544 = vmatprep.subr.bf16.mxu0 %v1942_v0  ;;  %s1460_s12 = sshll.u32 %s392_s28, 4  ;;  %s2330_s17 = scalar_lea.sflag [#allocation4], %s392_s28 }
  0x70   : > { %s394_s26 = scalar_lea.vmem [#allocation8], %s1460_s12  ;;  %p2408_p7 = scmp.ne.s32.totalorder %s2397_s23, 0 }
  0x71   : > { %1535 = vmatmul.mubr.msk.bf16.vlgmr.msra.gmra.mrb[0].mxu0 %vm427_vm1, %v403_v5  ;;  %s1357_s29 = sshll.u32 %s394_s26, 4  ;;  %s2327_s29 = int_to_ptr.vmem [resolvable:$true] %s1357_s29 }
  0x72   : > { %1546 = vmatprep.mubr.msk.bf16.mxu0 %vm1943_vm0, %v1942_v0 }
 0x144   : > { %v465_v7 = vpop.f32.mrb[0].mxu0 }
 0x145   : > { %v1536_v8 = vpop.f32.mrb[1].mxu0  ;;  %v466_v10 = vadd.f32 %v1463_v6, %v465_v7 }
 0x146   : > { %v468_v9 = vpop.f32.mrb[2].mxu0 }
 0x147   : > { %v469_v11 = vadd.f32 %v1463_v6, %v468_v9  ;;  %v1537_v12 = vpop.f32.mrb[3].mxu0 }
 0x149   : > { %v1707_v13 = vpack.i.bf16 %v469_v11, %v466_v10  ;;  %v2188_v14 = vpack.c.bf16 %v469_v11, %v466_v10 }
 0x14b   : > { %1708 = vrot.lane.b32.xlu1 %v1707_v13, %s1944_s11  ;;  %1698 = vrot.lane.b32.xlu0 %v1707_v13, %s1945_s22 }
 0x14f   : > { %1703 = vrot.lane.b32.xlu0 %v1707_v13, %s1946_s27  ;;  %497 = vrot.lane.b32.xlu1 %v2188_v14, %s1947_s30  ;;  %s2324_s27 = scalar_lea.hbm %s2382_s10, %s1499_s21 }
 0x1bd   : > { %v1709_v15 = vpop.permute.xlu1 %1708  ;;  %v1699_v16 = vpop.permute.xlu0 %1698 }
 0x1be   : > { %v1701_v17 = vunpack.i.h.bf16 %v1699_v16  ;;  %v1700_v18 = vunpack.i.l.bf16 %v1699_v16  ;;  %v1711_v19 = vunpack.i.h.bf16 %v1709_v15  ;;  %v1710_v20 = vunpack.i.l.bf16 %v1709_v15 }
 0x1c0   : > { %v2191_v21 = vpack.c.bf16 %v1701_v17, %v1700_v18  ;;  %v2195_v27 = vpack.c.bf16 %v1711_v19, %v1710_v20 }
 0x1c1   : > { %v1704_v22 = vpop.permute.xlu0 %1703  ;;  %v498_v23 = vpop.permute.xlu1 %497 }
 0x1c2   : > { %v1706_v24 = vunpack.i.h.bf16 %v1704_v22  ;;  %v1705_v25 = vunpack.i.l.bf16 %v1704_v22  ;;  %548 = vrot.lane.b32.xlu0 %v2191_v21, %s1947_s30  ;;  %v504_v26 = vsel %vm499_vm2, %v498_v23, 0 }
 0x1c3   : > { %1539 = vmatpush3.bf16.xpose.msra.mxu1 %v504_v26 }
 0x1c4   : > { %v2197_v28 = vpack.c.bf16 %v1706_v24, %v1705_v25  ;;  %1550 = vmatprep.subr.bf16.mxu1 %v1942_v0 }
 0x1c6   : > { %648 = vrot.lane.b32.xlu0 %v2195_v27, %s1947_s30  ;;  %598 = vrot.lane.b32.xlu1 %v2197_v28, %s1947_s30  ;;  %s1865_s30 = scalar_lea.vmem %s2327_s29, 256 }
 0x1c7   : > { %p1866_p12 = scmp.ne.s32.totalorder %s2327_s29, %s1865_s30 }
 0x1c9   : > { %p1867_p8 = pnand %p1866_p12, %p2408_p7 }
 0x1ca   : > { %1541 = vmatmul.mubr.msk.bf16.vlgmr.msra.gmra.mrb[0].mxu1 %vm499_vm2, %v2188_v14 }
 0x1cb   : > { %1552 = vmatprep.mubr.msk.bf16.mxu1 %vm1943_vm0, %v1942_v0  ;;  %p1868_p11 = pneg %p1867_p8 }
 0x234   : > { %v549_v29 = vpop.permute.xlu0 %548 }
 0x235   : > { %v554_v30 = vsel %vm499_vm2, %v549_v29, 0 }
 0x236   : > { %1545 = vmatpush3.bf16.xpose.msra.mxu0 %v554_v30 }
 0x237   : > { %1556 = vmatprep.subr.bf16.mxu0 %v1942_v0 }
 0x238   : > { %v599_v31 = vpop.permute.xlu1 %598  ;;  %v649_v33 = vpop.permute.xlu0 %648 }
 0x239   : > { %v604_v32 = vsel %vm499_vm2, %v599_v31, 0  ;;  %v654_v34 = vsel %vm499_vm2, %v649_v33, 0 }
 0x23a   : > { %1551 = vmatpush3.bf16.xpose.msra.mxu1 %v604_v32 }
 0x23b   : > { %1562 = vmatprep.subr.bf16.mxu1 %v1942_v0 }
 0x23d   : > { %1547 = vmatmul.mubr.msk.bf16.vlgmr.msra.gmra.mrb[4].mxu0 %vm499_vm2, %v2191_v21 }
 0x23e   : > { %1557 = vmatpush3.bf16.xpose.msra.mxu0 %v654_v34  ;;  %1558 = vmatprep.mubr.msk.bf16.mxu0 %vm1943_vm0, %v1942_v0 }
 0x23f   : > { %1568 = vmatprep.subr.bf16.mxu0 %v1942_v0 }
 0x241   : > { %1553 = vmatmul.mubr.msk.bf16.vlgmr.msra.gmra.mrb[4].mxu1 %vm499_vm2, %v2197_v28 }
 0x242   : > { %1564 = vmatprep.mubr.msk.bf16.mxu1 %vm1943_vm0, %v1942_v0 }
 0x245   : > { %1559 = vmatmul.mubr.msk.bf16.vlgmr.msra.gmra.mrb[8].mxu0 %vm499_vm2, %v2195_v27 }
 0x246   : > { %1570 = vmatprep.mubr.msk.bf16.mxu0 %vm1943_vm0, %v1942_v0 }
 0x29d   : > { %v540_v35 = vpop.f32.mrb[0].mxu1 }
 0x29e   : > { %v697_v36 = vmul.f32 0.35355338, %v540_v35  ;;  %v1542_v37 = vpop.f32.mrb[1].mxu1 }
 0x29f   : > { %v543_v38 = vpop.f32.mrb[2].mxu1 }
 0x2a0   : > { %v698_v39 = vmul.f32 0.35355338, %v543_v38  ;;  %v1543_v40 = vpop.f32.mrb[3].mxu1  ;;  %v706_v41 = vsel %vm705_vm3, %v697_v36, -inf }
 0x2a1   : > { %707 = vmax.xlane.f32.xlu1 %v706_v41 }
 0x2a2   : > { %v709_v42 = vsel %vm705_vm3, %v698_v39, -inf }
 0x2a3   : > { %710 = vmax.xlane.f32.xlu0 %v709_v42 }
 0x310   : > { %v590_v43 = vpop.f32.mrb[4].mxu0 }
 0x311   : > { %v699_v44 = vmul.f32 0.35355338, %v590_v43  ;;  %v1548_v45 = vpop.f32.mrb[5].mxu0 }
 0x312   : > { %v593_v46 = vpop.f32.mrb[6].mxu0 }
 0x313   : > { %v700_v47 = vmul.f32 0.35355338, %v593_v46  ;;  %v1549_v48 = vpop.f32.mrb[7].mxu0  ;;  %v712_v49 = vsel %vm705_vm3, %v699_v44, -inf }
 0x314   : > { %v640_v50 = vpop.f32.mrb[4].mxu1  ;;  %713 = vmax.xlane.f32.xlu0 %v712_v49 }
 0x315   : > { %v701_v51 = vmul.f32 0.35355338, %v640_v50  ;;  %v1554_v52 = vpop.f32.mrb[5].mxu1  ;;  %v715_v53 = vsel %vm705_vm3, %v700_v47, -inf }
 0x316   : > { %v643_v54 = vpop.f32.mrb[6].mxu1  ;;  %716 = vmax.xlane.f32.xlu1 %v715_v53 }
 0x317   : > { %v702_v55 = vmul.f32 0.35355338, %v643_v54  ;;  %v1555_v56 = vpop.f32.mrb[7].mxu1  ;;  %v718_v57 = vsel %vm705_vm3, %v701_v51, -inf }
 0x318   : > { %719 = vmax.xlane.f32.xlu0 %v718_v57  ;;  %v690_v58 = vpop.f32.mrb[8].mxu0 }
 0x319   : > { %v703_v59 = vmul.f32 0.35355338, %v690_v58  ;;  %v1560_v60 = vpop.f32.mrb[9].mxu0  ;;  %v721_v61 = vsel %vm705_vm3, %v702_v55, -inf }
 0x31a   : > { %722 = vmax.xlane.f32.xlu1 %v721_v61  ;;  %v693_v62 = vpop.f32.mrb[10].mxu0 }
 0x31b   : > { %v704_v63 = vmul.f32 0.35355338, %v693_v62  ;;  %v1561_v1 = vpop.f32.mrb[11].mxu0  ;;  %v724_v2 = vsel %vm705_vm3, %v703_v59, -inf }
 0x31c   : > { %725 = vmax.xlane.f32.xlu0 %v724_v2 }
 0x31d   : > { %v727_v5 = vsel %vm705_vm3, %v704_v63, -inf }
 0x31e   : > { %728 = vmax.xlane.f32.xlu1 %v727_v5 }
 0x32e   : > { %v708_v6 = vpop.xlane.xlu1 %707 }
 0x32f   : > { %845 = vrot.lane.b32.xlu1 %v2191_v21, %s1948_s18  ;;  %v730_v8 = vsub.f32 %v697_v36, %v708_v6 }
 0x330   : > { %v711_v7 = vpop.xlane.xlu0 %710 }
 0x331   : > { %v731_v9 = vsub.f32 %v698_v39, %v711_v7  ;;  %v738_v10 = vmul.f32 1.442695, %v730_v8 }
 0x332   : > { %798 = vrot.lane.b32.xlu0 %v2188_v14, %s1948_s18 }
 0x333   : > { %v740_v11 = vmul.f32 1.442695, %v731_v9  ;;  %1737 = vpow2.f32 %v738_v10 }
 0x335   : > { %1739 = vpow2.f32 %v740_v11 }
 0x33d   : > { %v1738_v12 = vpop.eup %1737 }
 0x33e   : > { %v754_v15 = vsel %vm705_vm3, %v1738_v12, 0.0 }
 0x33f   : > { %v1740_v13 = vpop.eup %1739 }
 0x340   : > { %v757_v16 = vsel %vm705_vm3, %v1740_v13, 0.0 }
 0x351   : > { %755 = vadd.xlane.f32.xlu0 %v754_v15 }
 0x353   : > { %758 = vadd.xlane.f32.xlu1 %v757_v16 }
 0x3a1   : > { %v714_v17 = vpop.xlane.xlu0 %713 }
 0x3a2   : > { %v732_v18 = vsub.f32 %v699_v44, %v714_v17 }
 0x3a3   : > { %v717_v19 = vpop.xlane.xlu1 %716 }
 0x3a4   : > { %v742_v14 = vmul.f32 1.442695, %v732_v18  ;;  %v733_v20 = vsub.f32 %v700_v47, %v717_v19 }
 0x3a5   : > { %v720_v21 = vpop.xlane.xlu0 %719 }
 0x3a6   : > { %1741 = vpow2.f32 %v742_v14  ;;  %v744_v22 = vmul.f32 1.442695, %v733_v20  ;;  %v734_v23 = vsub.f32 %v701_v51, %v720_v21  ;;  %v1729_v21 = vld [vmem:[#allocation2] sm:$0xff]  }
 0x3a7   : > { %v723_v24 = vpop.xlane.xlu1 %722 }
 0x3a8   : > { %1743 = vpow2.f32 %v744_v22  ;;  %v746_v25 = vmul.f32 1.442695, %v734_v23  ;;  %v735_v26 = vsub.f32 %v702_v55, %v723_v24  ;;  %v1730_v24 = vld [vmem:[#allocation2 + $0x8] sm:$0xff]  }
 0x3a9   : > { %v726_v29 = vpop.xlane.xlu0 %725 }
 0x3aa   : > { %1745 = vpow2.f32 %v746_v25  ;;  %v748_v30 = vmul.f32 1.442695, %v735_v26  ;;  %v736_v31 = vsub.f32 %v703_v59, %v726_v29 }
 0x3ab   : > { %v729_v32 = vpop.xlane.xlu1 %728 }
 0x3ac   : > { %1747 = vpow2.f32 %v748_v30  ;;  %v750_v33 = vmul.f32 1.442695, %v736_v31  ;;  %v737_v34 = vsub.f32 %v704_v63, %v729_v32 }
 0x3ad   : > { %v799_v35 = vpop.permute.xlu0 %798 }
 0x3ae   : > { %1749 = vpow2.f32 %v750_v33  ;;  %v752_v36 = vmul.f32 1.442695, %v737_v34  ;;  %1563 = vmatpush3.bf16.msra.mxu1 %v799_v35 }
 0x3af   : > { %v846_v37 = vpop.permute.xlu1 %845  ;;  %1574 = vmatprep.subr.bf16.mxu1 %v1942_v0 }
 0x3b0   : > { %v1742_v38 = vpop.eup %1741  ;;  %1751 = vpow2.f32 %v752_v36  ;;  %1569 = vmatpush3.bf16.msra.mxu0 %v846_v37 }
 0x3b1   : > { %v760_v39 = vsel %vm705_vm3, %v1742_v38, 0.0  ;;  %1580 = vmatprep.subr.bf16.mxu0 %v1942_v0 }
 0x3b2   : > { %v1744_v40 = vpop.eup %1743  ;;  %761 = vadd.xlane.f32.xlu0 %v760_v39 }
 0x3b3   : > { %v763_v41 = vsel %vm705_vm3, %v1744_v40, 0.0 }
 0x3b4   : > { %v1746_v42 = vpop.eup %1745  ;;  %764 = vadd.xlane.f32.xlu1 %v763_v41 }
 0x3b5   : > { %v766_v43 = vsel %vm705_vm3, %v1746_v42, 0.0 }
 0x3b6   : > { %v1748_v44 = vpop.eup %1747  ;;  %767 = vadd.xlane.f32.xlu0 %v766_v43 }
 0x3b7   : > { %v769_v45 = vsel %vm705_vm3, %v1748_v44, 0.0 }
 0x3b8   : > { %v1750_v46 = vpop.eup %1749  ;;  %770 = vadd.xlane.f32.xlu1 %v769_v45 }
 0x3b9   : > { %v772_v47 = vsel %vm705_vm3, %v1750_v46, 0.0 }
 0x3ba   : > { %v1752_v48 = vpop.eup %1751  ;;  %773 = vadd.xlane.f32.xlu0 %v772_v47 }
 0x3bb   : > { %v775_v49 = vsel %vm705_vm3, %v1752_v48, 0.0 }
 0x3bc   : > { %776 = vadd.xlane.f32.xlu1 %v775_v49 }
 0x3cd   : > { %892 = vrot.lane.b32.xlu1 %v2197_v28, %s1948_s18 }
 0x3d0   : > { %939 = vrot.lane.b32.xlu0 %v2195_v27, %s1948_s18  ;;  %s1952_s18 = smov [#allocation8]  }
 0x3de   : > { %v756_v50 = vpop.xlane.xlu0 %755 }
 0x3df   : > { %1753 = vrcp.f32 %v756_v50 }
 0x3e0   : > { %v759_v51 = vpop.xlane.xlu1 %758 }
 0x3e1   : > { %1755 = vrcp.f32 %v759_v51 }
 0x3e9   : > { %v1754_v52 = vpop.eup %1753 }
 0x3ea   : > { %v786_v54 = vmul.f32 %v1754_v52, %v1738_v12 }
 0x3eb   : > { %v1756_v53 = vpop.eup %1755 }
 0x3ec   : > { %v787_v55 = vmul.f32 %v1756_v53, %v1740_v13 }
 0x3ee   : > { %v794_v56 = vpack.c.bf16 %v787_v55, %v786_v54 }
 0x3f0   : > { %1565 = vmatmul.mubr.msk.bf16.vlgmr.msra.gmra.mrb[8].mxu1 %vm705_vm3, %v794_v56  ;;  %v1475_v56 = vld [vmem:[%s2376_s4] ss:$0 sm:$0xff] }
 0x3f1   : > { %1576 = vmatprep.mubr.msk.bf16.mxu1 %vm1943_vm0, %v1942_v0 }
 0x43f   : > { %v762_v57 = vpop.xlane.xlu0 %761 }
 0x440   : > { %1757 = vrcp.f32 %v762_v57 }
 0x441   : > { %v765_v28 = vpop.xlane.xlu1 %764 }
 0x442   : > { %1759 = vrcp.f32 %v765_v28 }
 0x443   : > { %v768_v58 = vpop.xlane.xlu0 %767 }
 0x444   : > { %1761 = vrcp.f32 %v768_v58 }
 0x445   : > { %v771_v27 = vpop.xlane.xlu1 %770 }
 0x446   : > { %1763 = vrcp.f32 %v771_v27 }
 0x447   : > { %v774_v59 = vpop.xlane.xlu0 %773 }
 0x448   : > { %1765 = vrcp.f32 %v774_v59 }
 0x449   : > { %v777_v60 = vpop.xlane.xlu1 %776 }
 0x44a   : > { %v1758_v61 = vpop.eup %1757  ;;  %1767 = vrcp.f32 %v777_v60 }
 0x44b   : > { %v788_v63 = vmul.f32 %v1758_v61, %v1742_v38  ;;  %v940_v10 = vpop.permute.xlu0 %939 }
 0x44c   : > { %v1760_v62 = vpop.eup %1759 }
 0x44d   : > { %v789_v1 = vmul.f32 %v1760_v62, %v1744_v40  ;;  %v893_v2 = vpop.permute.xlu1 %892 }
 0x44e   : > { %v1762_v5 = vpop.eup %1761  ;;  %1575 = vmatpush3.bf16.msra.mxu1 %v893_v2 }
 0x44f   : > { %v795_v6 = vpack.c.bf16 %v789_v1, %v788_v63  ;;  %1586 = vmatprep.subr.bf16.mxu1 %v1942_v0  ;;  %v790_v8 = vmul.f32 %v1762_v5, %v1746_v42 }
 0x450   : > { %v1764_v7 = vpop.eup %1763 }
 0x451   : > { %v791_v9 = vmul.f32 %v1764_v7, %v1748_v44  ;;  %1571 = vmatmul.mubr.msk.bf16.vlgmr.msra.gmra.mrb[12].mxu0 %vm705_vm3, %v795_v6 }
 0x452   : > { %v1766_v11 = vpop.eup %1765  ;;  %1581 = vmatpush3.bf16.msra.mxu0 %v940_v10  ;;  %1582 = vmatprep.mubr.msk.bf16.mxu0 %vm1943_vm0, %v1942_v0 }
 0x453   : > { %v796_v12 = vpack.c.bf16 %v791_v9, %v790_v8  ;;  %1594 = vmatprep.subr.bf16.mxu0 %v1942_v0  ;;  %v792_v15 = vmul.f32 %v1766_v11, %v1750_v46 }
 0x454   : > { %v1768_v13 = vpop.eup %1767 }
 0x455   : > { %v793_v16 = vmul.f32 %v1768_v13, %v1752_v48  ;;  %1577 = vmatmul.mubr.msk.bf16.vlgmr.msra.gmra.mrb[12].mxu1 %vm705_vm3, %v796_v12  ;;  %v1731_v13 = vld [vmem:[#allocation5] sm:$0xff]  }
 0x456   : > { %1590 = vmatprep.mubr.msk.bf16.mxu1 %vm1943_vm0, %v1942_v0  ;;  %1587 = vmatpush3.bf16.msra.mxu1 %v1729_v21 }
 0x457   : > { %v797_v17 = vpack.c.bf16 %v793_v16, %v792_v15  ;;  %1588 = vmatprep.subr.bf16.mxu1 %v1942_v0 }
 0x459   : > { %1583 = vmatmul.mubr.msk.bf16.vlgmr.msra.gmra.mrb[16].mxu0 %vm705_vm3, %v797_v17 }
 0x45a   : > { %1598 = vmatprep.mubr.msk.bf16.mxu0 %vm1943_vm0, %v1942_v0  ;;  %1589 = vmatpush3.bf16.msra.mxu1 %v1730_v24 }
 0x45b   : > { %1602 = vmatprep.subr.bf16.mxu1 %v1942_v0  ;;  %1595 = vmatpush3.bf16.msra.mxu0 %v1731_v13 }
 0x45c   : > { %1596 = vmatprep.subr.bf16.mxu0 %v1942_v0 }
 0x4c3   : > { %v838_v18 = vpop.f32.mrb[8].mxu1 }
 0x4c4   : > { %v1566_v19 = vpop.f32.mrb[9].mxu1 }
 0x4c5   : > { %v841_v14 = vpop.f32.mrb[10].mxu1 }
 0x4c6   : > { %v1567_v20 = vpop.f32.mrb[11].mxu1 }
 0x524   : > { %v885_v22 = vpop.f32.mrb[12].mxu0 }
 0x525   : > { %v1572_v23 = vpop.f32.mrb[13].mxu0 }
 0x526   : > { %v888_v25 = vpop.f32.mrb[14].mxu0 }
 0x527   : > { %v1712_v26 = vpack.i.bf16 %v888_v25, %v885_v22  ;;  %v1573_v29 = vpop.f32.mrb[15].mxu0  ;;  %v1479_v22 = vld [vmem:[%s2381_s9] ss:$0 sm:$0xff] }
 0x528   : > { %v932_v30 = vpop.f32.mrb[12].mxu1 }
 0x529   : > { %v1578_v31 = vpop.f32.mrb[13].mxu1  ;;  %1713 = vrot.lane.b32.xlu1 %v1712_v26, %s1949_s20  ;;  %v1480_v26 = vld [vmem:[%s2381_s9 + $0x1] ss:$0 sm:$0xff] }
 0x52a   : > { %v935_v32 = vpop.f32.mrb[14].mxu1 }
 0x52b   : > { %v1717_v33 = vpack.i.bf16 %v935_v32, %v932_v30  ;;  %v1579_v34 = vpop.f32.mrb[15].mxu1 }
 0x52c   : > { %v979_v35 = vpop.f32.mrb[16].mxu0  ;;  %v1734_v34 = vld [vmem:[%s2379_s7 + $0x8] sm:$0xff]  }
 0x52d   : > { %1718 = vrot.lane.b32.xlu0 %v1717_v33, %s1950_s15  ;;  %v1584_v36 = vpop.f32.mrb[17].mxu0  ;;  %v1733_v33 = vld [vmem:[%s2379_s7] sm:$0xff]   ;;  %s1869_s15 = sshll.u32 %s1952_s18, 4  ;;  %s1870_s15 = int_to_ptr.vmem [resolvable:$false] %s1869_s15 }
 0x52e   : > { %v982_v37 = vpop.f32.mrb[18].mxu0  ;;  %v1736_v36 = vld [vmem:[%s2379_s7 + $0x18] sm:$0xff]   ;;  %p1872_p13 = scmp.lt.s32.totalorder %s2327_s29, %s1870_s15 }
 0x52f   : > { %v1722_v38 = vpack.i.bf16 %v982_v37, %v979_v35  ;;  %v1585_v39 = vpop.f32.mrb[19].mxu0  ;;  %v1735_v35 = vld [vmem:[%s2379_s7 + $0x10] sm:$0xff]   ;;  %v1481_v37 = vld [vmem:[#allocation7] ss:$0 sm:$0xff] }
 0x531   : > { %1723 = vrot.lane.b32.xlu1 %v1722_v38, %s1951_s25  ;;  %s1871_s25 = scalar_lea.vmem %s1870_s15, 512 }
 0x532   : > { %p1873_p1 = scmp.lt.s32.totalorder %s1871_s25, %s1865_s30 }
 0x534   : > { %p1874_p6 = por %p1873_p1, %p1872_p13 }
 0x536   : > { %p1875_p9 = pnand %p1874_p6, %p1868_p11 }
 0x59b   : > { %v1714_v40 = vpop.permute.xlu1 %1713 }
 0x59c   : > { %v1716_v42 = vunpack.i.h.bf16 %v1714_v40  ;;  %v1715_v43 = vunpack.i.l.bf16 %v1714_v40 }
 0x59e   : > { %v1011_v47 = vsel %vm499_vm2, %v841_v14, %v1716_v42  ;;  %v1010_v48 = vsel %vm499_vm2, %v838_v18, %v1715_v43 }
 0x59f   : > { %v1719_v41 = vpop.permute.xlu0 %1718 }
 0x5a0   : > { %v1721_v44 = vunpack.i.h.bf16 %v1719_v41  ;;  %v1720_v45 = vunpack.i.l.bf16 %v1719_v41 }
 0x5a2   : > { %v1012_v51 = vsel %vm705_vm3, %v1010_v48, %v1720_v45  ;;  %v1013_v52 = vsel %vm705_vm3, %v1011_v47, %v1721_v44 }
 0x5a3   : > { %v1724_v46 = vpop.permute.xlu1 %1723 }
 0x5a4   : > { %v1726_v49 = vunpack.i.h.bf16 %v1724_v46  ;;  %v1725_v50 = vunpack.i.l.bf16 %v1724_v46 }
 0x5a6   : > { %v1016_v53 = vsel %vm1014_vm4, %v1013_v52, %v1726_v49  ;;  %v1015_v54 = vsel %vm1014_vm4, %v1012_v51, %v1725_v50 }
 0x5a7   : > { %v1017_v55 = vpack.c.bf16 %v1016_v53, %v1015_v54 }
 0x5a9   : > { %1591 = vmatmul.mubr.msk.bf16.vlgmr.msra.gmra.mrb[16].mxu1 %vm427_vm1, %v1017_v55 }
 0x5aa   : > { %1610 = vmatprep.mubr.msk.bf16.mxu1 %vm1943_vm0, %v1942_v0  ;;  %1603 = vmatpush3.bf16.msra.mxu1 %v1733_v33 }
 0x5ab   : > { %1604 = vmatprep.subr.bf16.mxu1 %v1942_v0 }
 0x5ae   : > { %1605 = vmatpush3.bf16.msra.mxu1 %v1734_v34 }
 0x5af   : > { %1606 = vmatprep.subr.bf16.mxu1 %v1942_v0 }
 0x5b2   : > { %1607 = vmatpush3.bf16.msra.mxu1 %v1735_v35 }
 0x5b3   : > { %1608 = vmatprep.subr.bf16.mxu1 %v1942_v0 }
 0x5b6   : > { %1609 = vmatpush3.bf16.msra.mxu1 %v1736_v36 }
 0x67c   : > { %v1078_v57 = vpop.f32.mrb[16].mxu1 }
 0x67d   : > { %v1079_v28 = vadd.f32 %v1475_v56, %v1078_v57  ;;  %v1592_v58 = vpop.f32.mrb[17].mxu1 }
 0x67e   : > { %v1081_v27 = vpop.f32.mrb[18].mxu1 }
 0x67f   : > { %v1082_v59 = vadd.f32 %v1475_v56, %v1081_v27  ;;  %v1593_v60 = vpop.f32.mrb[19].mxu1  ;;  %v1085_v61 = vadd.f32 %v1079_v28, %v2174_v3 }
 0x680   : > { %v1485_v60 = vld [vmem:[%s2380_s8] ss:$0 sm:$0xff] }
 0x681   : > { %v1089_v62 = vsel %vm427_vm1, %v1085_v61, 0.0  ;;  %v1086_v63 = vadd.f32 %v1082_v59, %v2176_v4  ;;  %v1732_v4 = vld [vmem:[#allocation5 + $0x8] sm:$0xff]  }
 0x682   : > { %1090 = vadd.xlane.f32.xlu0 %v1089_v62  ;;  %1597 = vmatpush3.bf16.msra.mxu0 %v1732_v4 }
 0x683   : > { %v1092_v1 = vsel %vm427_vm1, %v1086_v63, 0.0 }
 0x684   : > { %1093 = vadd.xlane.f32.xlu1 %v1092_v1 }
 0x70f   : > { %v1091_v2 = vpop.xlane.xlu0 %1090 }
 0x710   : > { %v1096_v5 = vmul.f32 0.03125, %v1091_v2 }
 0x711   : > { %v1094_v6 = vpop.xlane.xlu1 %1093 }
 0x712   : > { %v1098_v7 = vsub.f32 %v1085_v61, %v1096_v5  ;;  %v1097_v8 = vmul.f32 0.03125, %v1094_v6 }
 0x714   : > { %v1099_v9 = vsub.f32 %v1086_v63, %v1097_v8  ;;  %v1100_v10 = vmul.f32 %v1098_v7, %v1098_v7 }
 0x716   : > { %v1102_v11 = vsel %vm427_vm1, %v1100_v10, 0.0  ;;  %v1101_v12 = vmul.f32 %v1099_v9, %v1099_v9 }
 0x717   : > { %1103 = vadd.xlane.f32.xlu0 %v1102_v11 }
 0x718   : > { %v1105_v3 = vsel %vm427_vm1, %v1101_v12, 0.0 }
 0x71b   : > { %1106 = vadd.xlane.f32.xlu0 %v1105_v3 }
 0x7a4   : > { %v1104_v15 = vpop.xlane.xlu0 %1103 }
 0x7a5   : > { %v1108_v16 = vmul.f32 0.03125, %v1104_v15 }
 0x7a7   : > { %v1110_v17 = vadd.f32 1e-05, %v1108_v16 }
 0x7a8   : > { %v1107_v18 = vpop.xlane.xlu0 %1106 }
 0x7a9   : > { %1769 = vrsqrt.f32 %v1110_v17  ;;  %v1109_v19 = vmul.f32 0.03125, %v1107_v18 }
 0x7ab   : > { %v1111_v14 = vadd.f32 1e-05, %v1109_v19 }
 0x7ad   : > { %1771 = vrsqrt.f32 %v1111_v14 }
 0x7b3   : > { %v1770_v20 = vpop.eup %1769 }
 0x7b4   : > { %v1114_v21 = vmul.f32 %v1770_v20, %v1098_v7 }
 0x7b6   : > { %v1120_v24 = vmul.f32 %v1479_v22, %v1114_v21 }
 0x7b7   : > { %v1772_v23 = vpop.eup %1771 }
 0x7b8   : > { %v1115_v25 = vmul.f32 %v1772_v23, %v1099_v9  ;;  %v1126_v30 = vadd.f32 %v1480_v26, %v1120_v24 }
 0x7ba   : > { %v1121_v29 = vmul.f32 %v1479_v22, %v1115_v25  ;;  %v1491_v25 = vld [vmem:[%s2381_s9 + $0x2] ss:$0 sm:$0xff] }
 0x7bc   : > { %v1127_v31 = vadd.f32 %v1480_v26, %v1121_v29 }
 0x7be   : > { %v1128_v32 = vpack.c.bf16 %v1127_v31, %v1126_v30 }
 0x7c0   : > { %1599 = vmatmul.mubr.msk.bf16.vlgmr.msra.gmra.mrb[20].mxu0 %vm427_vm1, %v1128_v32 }
 0x893   : > { %v1189_v38 = vpop.f32.mrb[20].mxu0 }
 0x894   : > { %v1190_v39 = vadd.f32 %v1481_v37, %v1189_v38  ;;  %v1600_v40 = vpop.f32.mrb[21].mxu0 }
 0x895   : > { %v1192_v41 = vpop.f32.mrb[22].mxu0 }
 0x896   : > { %v1196_v42 = vmul.f32 %v1190_v39, %v1190_v39  ;;  %v1193_v43 = vadd.f32 %v1481_v37, %v1192_v41  ;;  %v1601_v44 = vpop.f32.mrb[23].mxu0 }
 0x898   : > { %v1198_v45 = vmul.f32 %v1196_v42, %v1190_v39  ;;  %v1197_v46 = vmul.f32 %v1193_v43, %v1193_v43 }
 0x89a   : > { %v1200_v47 = vmul.f32 0.044715, %v1198_v45  ;;  %v1199_v48 = vmul.f32 %v1197_v46, %v1193_v43 }
 0x89c   : > { %v1202_v49 = vadd.f32 %v1200_v47, %v1190_v39  ;;  %v1201_v50 = vmul.f32 0.044715, %v1199_v48 }
 0x89e   : > { %v1204_v0 = vmul.f32 0.7978846, %v1202_v49  ;;  %v1203_v51 = vadd.f32 %v1201_v50, %v1193_v43 }
 0x8a0   : > { %1773 = vtanh.f32 %v1204_v0  ;;  %v1205_v52 = vmul.f32 0.7978846, %v1203_v51 }
 0x8a2   : > { %1775 = vtanh.f32 %v1205_v52 }
 0x8aa   : > { %v1774_v53 = vpop.eup %1773 }
 0x8ab   : > { %v1208_v54 = vadd.f32 1.0, %v1774_v53 }
 0x8ac   : > { %v1776_v55 = vpop.eup %1775 }
 0x8ad   : > { %v1210_v56 = vmul.f32 0.5, %v1208_v54  ;;  %v1209_v57 = vadd.f32 1.0, %v1776_v55 }
 0x8af   : > { %v1211_v28 = vmul.f32 0.5, %v1209_v57  ;;  %v1212_v58 = vmul.f32 %v1210_v56, %v1190_v39 }
 0x8b1   : > { %v1213_v27 = vmul.f32 %v1211_v28, %v1193_v43 }
 0x8b3   : > { %v1214_v59 = vpack.c.bf16 %v1213_v27, %v1212_v58 }
 0x8b5   : > { %1611 = vmatmul.mubr.msk.bf16.vlgmr.msra.gmra.mrb[20].mxu1 %vm1254_vm5, %v1214_v59 }
 0x988   : > { %v1292_v61 = vpop.f32.mrb[20].mxu1 }
 0x989   : > { %v1293_v62 = vadd.f32 %v1485_v60, %v1292_v61  ;;  %v1612_v63 = vpop.f32.mrb[21].mxu1 }
 0x98a   : > { %v1295_v1 = vpop.f32.mrb[22].mxu1 }
 0x98b   : > { %v1296_v2 = vadd.f32 %v1485_v60, %v1295_v1  ;;  %v1613_v5 = vpop.f32.mrb[23].mxu1  ;;  %v1299_v6 = vadd.f32 %v1293_v62, %v1126_v30  ;;  %v1492_v30 = vld [vmem:[%s2381_s9 + $0x3] ss:$0 sm:$0xff] }
 0x98d   : > { %v1303_v7 = vsel %vm427_vm1, %v1299_v6, 0.0  ;;  %v1300_v8 = vadd.f32 %v1296_v2, %v1127_v31 }
 0x98e   : > { %1304 = vadd.xlane.f32.xlu1 %v1303_v7 }
 0x98f   : > { %v1306_v9 = vsel %vm427_vm1, %v1300_v8, 0.0 }
 0x990   : > { %1307 = vadd.xlane.f32.xlu0 %v1306_v9 }
 0xa1b   : > { %v1305_v10 = vpop.xlane.xlu1 %1304 }
 0xa1c   : > { %v1309_v11 = vmul.f32 0.03125, %v1305_v10 }
 0xa1d   : > { %v1308_v12 = vpop.xlane.xlu0 %1307 }
 0xa1e   : > { %v1311_v3 = vsub.f32 %v1299_v6, %v1309_v11  ;;  %v1310_v13 = vmul.f32 0.03125, %v1308_v12 }
 0xa20   : > { %v1312_v4 = vsub.f32 %v1300_v8, %v1310_v13  ;;  %v1313_v15 = vmul.f32 %v1311_v3, %v1311_v3 }
 0xa22   : > { %v1315_v16 = vsel %vm427_vm1, %v1313_v15, 0.0  ;;  %v1314_v17 = vmul.f32 %v1312_v4, %v1312_v4 }
 0xa23   : > { %1316 = vadd.xlane.f32.xlu1 %v1315_v16 }
 0xa24   : > { %v1318_v18 = vsel %vm427_vm1, %v1314_v17, 0.0 }
 0xa25   : > { %1319 = vadd.xlane.f32.xlu0 %v1318_v18 }
 0xab0   : > { %v1317_v19 = vpop.xlane.xlu1 %1316 }
 0xab1   : > { %v1321_v14 = vmul.f32 0.03125, %v1317_v19 }
 0xab2   : > { %v1320_v20 = vpop.xlane.xlu0 %1319 }
 0xab3   : > { %v1323_v21 = vadd.f32 1e-05, %v1321_v14  ;;  %v1322_v22 = vmul.f32 0.03125, %v1320_v20 }
 0xab5   : > { %1777 = vrsqrt.f32 %v1323_v21  ;;  %v1324_v23 = vadd.f32 1e-05, %v1322_v22 }
 0xab7   : > { %1779 = vrsqrt.f32 %v1324_v23 }
 0xabf   : > { %v1778_v24 = vpop.eup %1777 }
 0xac0   : > { %v1327_v26 = vmul.f32 %v1778_v24, %v1311_v3 }
 0xac1   : > { %v1780_v29 = vpop.eup %1779 }
 0xac2   : > { %v1333_v31 = vmul.f32 %v1491_v25, %v1327_v26  ;;  %v1328_v32 = vmul.f32 %v1780_v29, %v1312_v4 }
 0xac4   : > { %v1339_v33 = vadd.f32 %v1492_v30, %v1333_v31  ;;  %v1334_v34 = vmul.f32 %v1491_v25, %v1328_v32 }
 0xac6   : > { %v1340_v35 = vadd.f32 %v1492_v30, %v1334_v34  ;;  %1341 = vst.msk [vmem:[%s394_s26] sm:$0xff] %vm427_vm1, %v1339_v33 }
 0xac8   : > { %1342 = vst.msk [vmem:[%s394_s26 + $0x8] sm:$0xff] %vm427_vm1, %v1340_v35 }
 0xac9   : > { %1878 = shalt.err (!%p1875_p9)
}
 0xaca   : > { %s1879_s28 = scalar_lea.hbm %s2324_s27, 256  ;;  %s1883_s16 = scalar_lea.hbm %s2382_s10, 512 }
 0xacb   : > { %p1880_p2 = scmp.ne.s32.totalorder %s2324_s27, %s1879_s28  ;;  %p1884_p4 = scmp.lt.u32.totalorder %s2324_s27, %s2382_s10 }
 0xacc   : > { %p1885_p5 = scmp.lt.u32.totalorder %s1883_s16, %s1879_s28  ;;  %p1887_p12 = scmp.lt.u32.totalorder %s1879_s28, %s2324_s27 }
 0xacd   : > { %p1881_p3 = pnand %p1880_p2, %p2408_p7 }
 0xace   : > { %p1886_p10 = por %p1885_p5, %p1884_p4 }
 0xacf   : > { %p1882_p0 = pneg %p1881_p3 }
 0xad0   : > { %p1888_p8 = por %p1887_p12, %p1886_p10 }
 0xad2   : > { %p1889_p11 = pnand %p1888_p8, %p1882_p0 }
 0xad4   : > { %1892 = shalt.err (!%p1889_p11)
}
 0xad5   : > { %s1953_s21 = smov 128  }
 0xad6   : > { %1626 = dma.vmem_to_hbm [thread:$0]  (%p2408_p7), %s2327_s29, 256, %s2324_s27, %s2330_s17, %s1953_s21, %s1953_s21, %s1949_s20  }
 0xad7 PF: > { %s2409_s26 = sld [smem:[#allocation14_spill]]  ;;  %s2410_s11 = sld [smem:[#allocation12_spill]] }
 0xad8   : > { %s2411_s22 = sld [smem:[#allocation17_spill]] }
 0xadd   : > { %p1648_p13 = scmp.ge.s32.totalorder %s2409_s26, 2  ;;  %s1372_s30 = sand.u32 1, %s2410_s11  }
 0xade   : > { %p2412_p1 = scmp.ne.s32.totalorder %s2411_s22, 0  ;;  %s1373_s18 = scalar_lea.sflag [#allocation4], %s1372_s30 }
 0xae0   : > { %p1639_p6 = pnand %p1648_p13, %p2412_p1 }
 0xae2   : > { %1918 = dma.done.wait (!%p1639_p6), %s1373_s18, 256  }
 0xae3   : > { %1920 = vsyncadd (!%p1639_p6), %s1373_s18, 4294967040  ;;  %s2413_s16 = sld [smem:[#allocation15_spill]]  ;;  %s2414_s15 = sld [smem:[#allocation13_spill]] }
 0xae4   : > { %s2415_s23 = sld [smem:[#allocation16_spill]]  ;;  %s2416_s13 = smov %s1927_s14 }
 0xae9   : > { %p22_p9 = scmp.ge.s32.totalorder %s2413_s16, 4   ;;  %s2417_s14 = smov %s2414_s15 }
 0xaea   : > { %s2418_s15 = smov %s2415_s23 }
 0xaeb   :  { %24 = sbr.rel (!%p22_p9) target bundleno = 5 (0x5), region = 108 }
 0xaf2   :  { %1378 = vsyncpa [#allocation3], 1 }
 0xaf3   :  { %1380 = vsyncpa [#allocation3 + $0x1], 1 }
 0xaf4   :  { %1381 = vsyncpa [#allocation6], 1 }
 0xaf5   :  { %1382 = vsyncpa [#allocation4], 1 }
 0xaf6   :  { %1384 = vsyncpa [#allocation4 + $0x1], 1 }

</bundles_post_ra>
